<compile_context>
chip_gen: v6e
topology: v6e:2x2x1
jax: 0.10.0
libtpu: 0.0.40
codegen_flags: <defaults>
</compile_context>

<pallas_src>
import functools

import jax
import jax.numpy as jnp
from jax.experimental import pallas as pl
from jax.experimental.pallas import tpu as pltpu


def _layernorm_kernel(x_ref, w_ref, b_ref, o_ref, *, eps, inv_h):
    # x_ref: (TM, Hp) native dtype; w_ref/b_ref: (1, Hp); padded lanes are zero.
    x = x_ref[...].astype(jnp.float32)
    # One-pass statistics (padded columns are zero, so the sums are exact);
    # divide by the TRUE hidden size (inv_h), not the padded one.
    s1 = jnp.sum(x, axis=-1, keepdims=True)
    s2 = jnp.sum(x * x, axis=-1, keepdims=True)
    mean = s1 * inv_h
    var = jnp.maximum(s2 * inv_h - mean * mean, 0.0)
    inv = jax.lax.rsqrt(var + eps)                       # eps inside sqrt (TF style)
    scale = w_ref[...].astype(jnp.float32) * inv         # (TM, Hp)
    b = b_ref[...].astype(jnp.float32)                   # (1, Hp)
    o_ref[...] = ((x - mean) * scale + b).astype(o_ref.dtype)


def _sublane_multiple(dtype):
    # f32 -> 8, bf16 -> 16, int8/fp8 -> 32 (sub-32-bit packs along sublanes)
    itemsize = jnp.dtype(dtype).itemsize
    return max(8, 32 // itemsize)


def _vmem_capacity_bytes():
    # Generation-aware VMEM capacity (128 MiB on v5e/v6e, 64 MiB per TC on v7x).
    try:
        return int(pltpu.get_tpu_info().vmem_capacity_bytes)
    except Exception:
        return 64 << 20  # conservative fallback (v7x per-TensorCore)


def _choose_block_rows(rows, hidden_padded, dtype, target_rows=1024,
                       vmem_budget_bytes=None):
    """Large, sublane-aligned row tile that fits the VMEM budget and leaves
    at least 2 grid steps (when rows permit) so both v7x TensorCores get work."""
    sub = _sublane_multiple(dtype)
    itemsize = jnp.dtype(dtype).itemsize
    if vmem_budget_bytes is None:
        vmem_budget_bytes = min(32 << 20, _vmem_capacity_bytes() // 4)
    # Per-row cost: double-buffered in + out tiles (native dtype) plus ~3 f32
    # temporaries live inside the body (one-pass stats -> no xc tile).
    per_row = hidden_padded * (4 * itemsize + 3 * 4)
    cap_rows = max(sub, vmem_budget_bytes // per_row)
    tm = min(int(target_rows), int(cap_rows))

    if rows <= sub:
        return rows  # single block equal to the full leading dim is always legal

    if rows > 2 * sub:
        # Prefer >= 2 grid steps: cap tm at ~rows/2 rounded down to the sublane
        # multiple (no effect on v5e/v6e correctness/perf; up to 2x on v7x).
        half = max(sub, ((rows // 2) // sub) * sub)
        tm = min(tm, half)

    tm = max(sub, (tm // sub) * sub)
    tm = min(tm, max(sub, (rows // sub) * sub))
    return tm


def bert_layer_norm(x, weight, bias, eps=1e-12, block_rows=None):
    orig_shape = x.shape
    hidden = int(orig_shape[-1])
    rows = 1
    for d in orig_shape[:-1]:
        rows *= int(d)

    x2 = x.reshape(rows, hidden)
    w2 = weight.reshape(1, hidden)
    b2 = bias.reshape(1, hidden)

    # Lane-dense hidden axis: pad to a multiple of 128 when needed. Padded x
    # columns are zero (sums unaffected); padded weight/bias are zero so the
    # padded output lanes are exactly zero and get sliced off below.
    hidden_padded = ((hidden + 127) // 128) * 128
    if hidden_padded != hidden:
        pad = hidden_padded - hidden
        x2 = jnp.pad(x2, ((0, 0), (0, pad)))
        w2 = jnp.pad(w2, ((0, 0), (0, pad)))
        b2 = jnp.pad(b2, ((0, 0), (0, pad)))

    sub = _sublane_multiple(x.dtype)
    if block_rows is not None:
        tm = max(1, min(int(block_rows), rows))
        if tm < rows:
            tm = min(max(sub, (tm // sub) * sub), rows)
    else:
        tm = _choose_block_rows(rows, hidden_padded, x.dtype)
    tm = max(1, min(int(tm), rows))
    grid = pl.cdiv(rows, tm)  # partial last block is masked by Pallas

    # Explicit VMEM limit from the actual tile footprint, clamped to 3/4 of the
    # queried per-core VMEM capacity (legal on v5e/v6e/v7x alike).
    itemsize = jnp.dtype(x.dtype).itemsize
    tile_native = tm * hidden_padded * itemsize
    tile_f32 = tm * hidden_padded * 4
    vmem_bytes = 2 * 2 * tile_native + 3 * tile_f32 + 2 * hidden_padded * 4 + (2 << 20)
    cap = _vmem_capacity_bytes()
    vmem_limit = int(min(max(vmem_bytes, 8 << 20), cap * 3 // 4))

    kernel = functools.partial(_layernorm_kernel, eps=float(eps),
                               inv_h=float(1.0 / hidden))

    out = pl.pallas_call(
        kernel,
        out_shape=jax.ShapeDtypeStruct((rows, hidden_padded), x.dtype),
        grid_spec=pltpu.PrefetchScalarGridSpec(
            num_scalar_prefetch=0,
            grid=(grid,),
            in_specs=[
                pl.BlockSpec((tm, hidden_padded), lambda i: (i, 0)),
                pl.BlockSpec((1, hidden_padded), lambda i: (0, 0)),  # weight: constant
                pl.BlockSpec((1, hidden_padded), lambda i: (0, 0)),  # bias:   constant
            ],
            out_specs=pl.BlockSpec((tm, hidden_padded), lambda i: (i, 0)),
        ),
        compiler_params=pltpu.CompilerParams(
            dimension_semantics=("parallel",),   # lets v7x shard rows across its 2 TCs
            vmem_limit_bytes=vmem_limit,
        ),
    )(x2, w2, b2)

    if hidden_padded != hidden:
        out = out[:, :hidden]
    return out.reshape(orig_shape)


def _reference(x, weight, bias, eps):
    u = jnp.mean(x, axis=-1, keepdims=True)
    s = jnp.mean((x - u) ** 2, axis=-1, keepdims=True)
    return weight * ((x - u) / jnp.sqrt(s + eps)) + bias


if __name__ == "__main__":
    eps = 1e-12

    # 1) Module-sized demo: batch=2, seq=8, hidden=32 (exercises the lane-pad path).
    #    Parameters match nn.Parameter(torch.ones/zeros(hidden)) init.
    x = jax.random.normal(jax.random.PRNGKey(0), (2, 8, 32), dtype=jnp.float32)
    weight = jnp.ones((32,), dtype=jnp.float32)
    bias = jnp.zeros((32,), dtype=jnp.float32)
    y = jax.block_until_ready(bert_layer_norm(x, weight, bias, eps=eps))
    assert jnp.allclose(y, _reference(x, weight, bias, eps), atol=1e-5, rtol=1e-5), \
        "mismatch vs reference (padded-hidden path)"

    # 2) Ragged rows (20) with an explicit small tile -> exercises cdiv /
    #    partial-last-block masking.
    x2 = jax.random.normal(jax.random.PRNGKey(1), (2, 10, 32), dtype=jnp.float32)
    y2 = jax.block_until_ready(bert_layer_norm(x2, weight, bias, eps=eps, block_rows=8))
    assert jnp.allclose(y2, _reference(x2, weight, bias, eps), atol=1e-5, rtol=1e-5), \
        "mismatch vs reference (ragged path)"

    # 3) Lane-dense hidden (no padding) with non-trivial affine params; rows=32
    #    so the auto-chooser produces >= 2 grid steps.
    w3 = 1.0 + 0.01 * jnp.arange(128, dtype=jnp.float32)
    b3 = 0.001 * jnp.arange(128, dtype=jnp.float32)
    x3 = jax.random.normal(jax.random.PRNGKey(2), (4, 8, 128), dtype=jnp.float32)
    y3 = jax.block_until_ready(bert_layer_norm(x3, w3, b3, eps=eps))
    assert jnp.allclose(y3, _reference(x3, w3, b3, eps), atol=1e-5, rtol=1e-5), \
        "mismatch vs reference (lane-dense path)"

    print("KERNEL_OK")
</pallas_src>

<mosaic_0001>
module attributes {stable_mosaic.version = 11 : i64} {
  func.func @_layernorm_kernel(%arg0: i32, %arg1: memref<16x128xf32, #tpu.memory_space<vmem>>, %arg2: memref<1x128xf32, #tpu.memory_space<vmem>>, %arg3: memref<1x128xf32, #tpu.memory_space<vmem>>, %arg4: memref<16x128xf32, #tpu.memory_space<vmem>>) attributes {dimension_semantics = [#tpu.dimension_semantics<parallel>], iteration_bounds = array<i64: 1>, scalar_prefetch = 0 : i64, scratch_operands = 0 : i64, tpu.core_type = #tpu.core_type<tc>, window_params = [{transform_indices = @transform_0, window_bounds = array<i64: 16, 128>}, {pipeline_mode = #tpu.pipeline_mode<synchronous>, transform_indices = @transform_1, window_bounds = array<i64: 1, 128>}, {pipeline_mode = #tpu.pipeline_mode<synchronous>, transform_indices = @transform_2, window_bounds = array<i64: 1, 128>}, {transform_indices = @transform_3, window_bounds = array<i64: 16, 128>}]} {
    %c0 = arith.constant 0 : index
    %c0_0 = arith.constant 0 : index
    %0 = vector.load %arg1[%c0, %c0_0] : memref<16x128xf32, #tpu.memory_space<vmem>>, vector<16x128xf32>
    %cst = arith.constant dense<0.000000e+00> : vector<16xf32>
    %1 = vector.multi_reduction <add>, %0, %cst [1] : vector<16x128xf32> to vector<16xf32>
    %2 = vector.shape_cast %1 : vector<16xf32> to vector<16x1xf32>
    %3 = arith.mulf %0, %0 : vector<16x128xf32>
    %cst_1 = arith.constant dense<0.000000e+00> : vector<16xf32>
    %4 = vector.multi_reduction <add>, %3, %cst_1 [1] : vector<16x128xf32> to vector<16xf32>
    %5 = vector.shape_cast %4 : vector<16xf32> to vector<16x1xf32>
    %cst_2 = arith.constant 3.125000e-02 : f32
    %6 = vector.broadcast %cst_2 : f32 to vector<16x1xf32>
    %7 = arith.mulf %2, %6 : vector<16x1xf32>
    %cst_3 = arith.constant 3.125000e-02 : f32
    %8 = vector.broadcast %cst_3 : f32 to vector<16x1xf32>
    %9 = arith.mulf %5, %8 : vector<16x1xf32>
    %10 = arith.mulf %7, %7 : vector<16x1xf32>
    %11 = arith.subf %9, %10 : vector<16x1xf32>
    %cst_4 = arith.constant 0.000000e+00 : f32
    %12 = vector.broadcast %cst_4 : f32 to vector<16x1xf32>
    %13 = arith.maximumf %11, %12 : vector<16x1xf32>
    %cst_5 = arith.constant 9.99999996E-13 : f32
    %14 = vector.broadcast %cst_5 : f32 to vector<16x1xf32>
    %15 = arith.addf %13, %14 : vector<16x1xf32>
    %16 = math.rsqrt %15 : vector<16x1xf32>
    %c0_6 = arith.constant 0 : index
    %c0_7 = arith.constant 0 : index
    %17 = vector.load %arg2[%c0_6, %c0_7] : memref<1x128xf32, #tpu.memory_space<vmem>>, vector<1x128xf32>
    %18 = vector.broadcast %17 : vector<1x128xf32> to vector<16x128xf32>
    %19 = vector.broadcast %16 : vector<16x1xf32> to vector<16x128xf32>
    %20 = arith.mulf %18, %19 : vector<16x128xf32>
    %c0_8 = arith.constant 0 : index
    %c0_9 = arith.constant 0 : index
    %21 = vector.load %arg3[%c0_8, %c0_9] : memref<1x128xf32, #tpu.memory_space<vmem>>, vector<1x128xf32>
    %22 = vector.broadcast %7 : vector<16x1xf32> to vector<16x128xf32>
    %23 = arith.subf %0, %22 : vector<16x128xf32>
    %24 = arith.mulf %23, %20 : vector<16x128xf32>
    %25 = vector.broadcast %21 : vector<1x128xf32> to vector<16x128xf32>
    %26 = arith.addf %24, %25 : vector<16x128xf32>
    %c0_10 = arith.constant 0 : index
    %c0_11 = arith.constant 0 : index
    %27 = vector.load %arg4[%c0_10, %c0_11] : memref<16x128xf32, #tpu.memory_space<vmem>>, vector<16x128xf32>
    tpu.vector_store %arg4[%c0_10, %c0_11], %26 {strides = array<i32>} : memref<16x128xf32, #tpu.memory_space<vmem>>, vector<16x128xf32>,
    return
  }
  func.func @transform_0(%arg0: i32) -> (i32, i32) {
    %c0_i32 = arith.constant 0 : i32
    %c0_i32_0 = arith.constant 0 : i32
    return %arg0, %c0_i32 : i32, i32
  }
  func.func @transform_1(%arg0: i32) -> (i32, i32) {
    %c0_i32 = arith.constant 0 : i32
    %c0_i32_0 = arith.constant 0 : i32
    %c0_i32_1 = arith.constant 0 : i32
    return %c0_i32, %c0_i32_0 : i32, i32
  }
  func.func @transform_2(%arg0: i32) -> (i32, i32) {
    %c0_i32 = arith.constant 0 : i32
    %c0_i32_0 = arith.constant 0 : i32
    %c0_i32_1 = arith.constant 0 : i32
    return %c0_i32, %c0_i32_0 : i32, i32
  }
  func.func @transform_3(%arg0: i32) -> (i32, i32) {
    %c0_i32 = arith.constant 0 : i32
    %c0_i32_0 = arith.constant 0 : i32
    return %arg0, %c0_i32 : i32, i32
  }
}

</mosaic_0001>

<bundles_post_ra>
// kernel: tpu_custom_call.1
= control target key start
LH: loop header
LB: loop body
LE: loop exit
PB: predicated region body
PF: predicated region fallthrough
CT: control target
= control target key end

     0   :  { %8 = vsyncpa [#allocation3], 0  ;;  %s192_s0 = inlined_call_operand.hbm [shape: f32[16,128], index: 0, kind: input, shape index: {}]   ;;  %s193_s1 = inlined_call_operand.vmem [shape: f32[1,128], index: 1, kind: input, shape index: {}]   ;;  %s194_s2 = inlined_call_operand.vmem [shape: f32[1,128], index: 2, kind: input, shape index: {}]   ;;  %s195_s3 = inlined_call_operand.hbm [shape: f32[16,128], index: 3, kind: output, shape index: {}]  }
   0x1   :  { %9 = vsyncpa [#allocation4], 0  ;;  %s150_s12 = smov [#allocation2]  }
   0x2   :  { %s15_s13 = sshll.u32 %s150_s12, 4  ;;  %s16_s13 = int_to_ptr.vmem [resolvable:$true] %s15_s13 }
   0x3   :  { %s114_s14 = scalar_lea.vmem %s16_s13, 256  ;;  %p119_p1 = scmp.lt.s32.totalorder %s16_s13, %s16_s13 }
   0x4   :  { %p115_p0 = scmp.ne.s32.totalorder %s16_s13, %s114_s14  ;;  %p120_p2 = scmp.lt.s32.totalorder %s114_s14, %s114_s14 }
   0x6   :  { %p121_p3 = por %p120_p2, %p119_p1 }
   0x8   :  { %p122_p4 = pnand %p121_p3, %p115_p0 }
   0xa   :  { %125 = shalt.err (!%p122_p4)
}
   0xb   :  { %s151_s15 = smov 128   ;;  %s152_s16 = smov 8  }
   0xc   :  { %21 = dma.hbm_to_vmem [thread:$0]  %s192_s0, 256, %s16_s13, [#allocation3], %s151_s15, %s151_s15, %s152_s16  }
   0xd   :  { %146 = dma.done.wait [#allocation3], 256  }
   0xe   :  { %147 = vsyncadd [#allocation3], 4294967040  ;;  %v29_v0 = vld [vmem:[#allocation2] sm:$0xff]  ;;  %v30_v1 = vld [vmem:[#allocation2 + $0x8] sm:$0xff]  ;;  %s153_s22 = smov [#allocation5]  }
   0xf   :  { %31 = vadd.xlane.f32.xlu0 %v29_v0  ;;  %v35_v2 = vmul.f32 %v29_v0, %v29_v0  ;;  %v36_v3 = vmul.f32 %v30_v1, %v30_v1  ;;  %v96_v20 = vld [vmem:[%s193_s1] ss:$0 sm:$0xff]  ;;  %s84_s23 = sshll.u32 %s153_s22, 4  ;;  %s85_s23 = int_to_ptr.vmem [resolvable:$true] %s84_s23 }
  0x10   :  { %v97_v24 = vld [vmem:[%s194_s2] ss:$0 sm:$0xff]  ;;  %s126_s1 = scalar_lea.vmem %s85_s23, 256  ;;  %p131_p6 = scmp.lt.s32.totalorder %s85_s23, %s85_s23 }
  0x11   :  { %37 = vadd.xlane.f32.xlu1 %v35_v2  ;;  %p127_p5 = scmp.ne.s32.totalorder %s85_s23, %s126_s1  ;;  %p132_p7 = scmp.lt.s32.totalorder %s126_s1, %s126_s1 }
  0x13   :  { %33 = vadd.xlane.f32.xlu0 %v30_v1  ;;  %p133_p8 = por %p132_p7, %p131_p6 }
  0x15   :  { %39 = vadd.xlane.f32.xlu1 %v36_v3  ;;  %p134_p9 = pnand %p133_p8, %p127_p5 }
  0x98   :  { %v32_v4 = vpop.xlane.xlu0 %31 }
  0x99   :  { %v41_v5 = vmul.f32 0.03125, %v32_v4 }
  0x9a   :  { %v38_v6 = vpop.xlane.xlu1 %37 }
  0x9b   :  { %v45_v7 = vmul.f32 %v41_v5, %v41_v5  ;;  %v43_v8 = vmul.f32 0.03125, %v38_v6  ;;  %v65_v22 = vsub.f32 %v29_v0, %v41_v5 }
  0x9c   :  { %v34_v9 = vpop.xlane.xlu0 %33 }
  0x9d   :  { %v47_v10 = vsub.f32 %v43_v8, %v45_v7  ;;  %v42_v11 = vmul.f32 0.03125, %v34_v9 }
  0x9e   :  { %v40_v12 = vpop.xlane.xlu1 %39 }
  0x9f   :  { %v49_v13 = vmax.f32 %v47_v10, 0.0  ;;  %v46_v14 = vmul.f32 %v42_v11, %v42_v11  ;;  %v44_v15 = vmul.f32 0.03125, %v40_v12  ;;  %v66_v27 = vsub.f32 %v30_v1, %v42_v11 }
  0xa1   :  { %v51_v16 = vadd.f32 1e-12, %v49_v13  ;;  %v48_v17 = vsub.f32 %v44_v15, %v46_v14 }
  0xa3   :  { %102 = vrsqrt.f32 %v51_v16  ;;  %v50_v18 = vmax.f32 %v48_v17, 0.0 }
  0xa5   :  { %v52_v19 = vadd.f32 1e-12, %v50_v18 }
  0xa7   :  { %104 = vrsqrt.f32 %v52_v19 }
  0xb0   :  { %v103_v21 = vpop.eup %102 }
  0xb1   :  { %v62_v23 = vmul.f32 %v103_v21, %v96_v20 }
  0xb3   :  { %v67_v25 = vmul.f32 %v65_v22, %v62_v23 }
  0xb4   :  { %v105_v26 = vpop.eup %104 }
  0xb5   :  { %v63_v28 = vmul.f32 %v105_v26, %v96_v20  ;;  %v75_v29 = vadd.f32 %v97_v24, %v67_v25 }
  0xb7   :  { %v68_v30 = vmul.f32 %v66_v27, %v63_v28  ;;  %77 = vst [vmem:[#allocation5] sm:$0xff] %v75_v29 }
  0xb9   :  { %v76_v31 = vadd.f32 %v97_v24, %v68_v30 }
  0xbb   :  { %78 = vst [vmem:[#allocation5 + $0x8] sm:$0xff] %v76_v31 }
  0xbc   :  { %137 = shalt.err (!%p134_p9)
}
  0xbd   :  { %90 = dma.vmem_to_hbm [thread:$0]  %s85_s23, 256, %s195_s3, [#allocation4], %s151_s15, %s151_s15, %s152_s16  }
  0xbe   :  { %148 = dma.done.wait [#allocation4], 256  }
  0xbf   :  { %149 = vsyncadd [#allocation4], 4294967040 }
  0xc0   :  { %94 = vsyncpa [#allocation3], 1 }
  0xc1   :  { %95 = vsyncpa [#allocation4], 1 }

</bundles_post_ra>
